<compile_context>
chip_gen: v7x
topology: tpu7x:2x2x1
jax: 0.10.0
libtpu: 0.0.40
codegen_flags: <defaults>
</compile_context>

<pallas_src>
import functools

import jax
import jax.numpy as jnp
from jax import lax
from jax.experimental import pallas as pl
from jax.experimental.pallas import tpu as pltpu


def _rcf_kernel(x_ref, w_ref, b_ref, seg_ref, out_ref, *, W, K, F2, Lv, inv_2p):
    # x_ref:   (C, L)        bf16  channel-major pixels, L = BB*H*W (lane axis)
    # w_ref:   (K*K, F2, C)  bf16  one (F2, C) filter matrix per tap
    # b_ref:   (F2, 1)       f32   conv bias
    # seg_ref: (Lv, BB)      f32   0/1: position p is a valid output AND in local batch b
    # out_ref: (1, 2*F2, BB) f32   [relu(conv).mean ; relu(-conv).mean] per local batch
    x = x_ref[...]

    # VALID conv, shift-the-input form: tap (kh, kw) reads pixel p + kh*W + kw, so a
    # static lane slice of length Lv aligns every valid output position across taps.
    conv = None
    for kh in range(K):
        for kw in range(K):
            off = kh * W + kw
            xs = x[:, off:off + Lv]                                    # (C, Lv)
            part = jnp.dot(w_ref[kh * K + kw], xs,
                           preferred_element_type=jnp.float32)         # (F2, Lv) f32
            conv = part if conv is None else conv + part
    conv = conv + b_ref[...]           # bias (F2, 1) broadcasts over the position axis

    # Both ReLU branches from one |conv|/conv pair, reduced over the valid positions
    # of each local batch with a single MXU matmul against the 0/1 segment matrix:
    #   s[f, b] = sum_p conv[f, p] * seg[p, b],  a[f, b] = sum_p |conv[f, p]| * seg[p, b]
    both = jnp.concatenate([conv, jnp.abs(conv)], axis=0)              # (2*F2, Lv)
    red = jnp.dot(both, seg_ref[...],
                  preferred_element_type=jnp.float32)                  # (2*F2, BB)
    s, a = red[:F2], red[F2:]

    # relu(c).mean = (sum|c| + sum c)/(2P),  relu(-c).mean = (sum|c| - sum c)/(2P)
    out_ref[0] = jnp.concatenate([(a + s) * inv_2p, (a - s) * inv_2p],
                                 axis=0).astype(out_ref.dtype)


def rcf_forward(x_nchw, weights, biases, *, block_batch=None,
                compute_dtype=jnp.bfloat16):
    """RCF forward. x_nchw: (B,C,H,W), weights: (F/2,C,K,K), biases: (F/2,)."""
    B, C, H, W = x_nchw.shape
    F2, Cw, K, K2 = weights.shape
    assert Cw == C and K == K2
    KK, HW = K * K, H * W
    Ho, Wo = H - K + 1, W - K + 1

    # Batch elements per grid step: amortizes per-step pipeline overhead; 8 keeps the
    # second-minor dim of the output block tile-aligned once B > 8.
    BB = min(B, 8) if block_batch is None else block_batch
    B_pad = ((B + BB - 1) // BB) * BB
    # Lane (minor) block dims must be 128-multiples unless they span the full array.
    if (BB * HW) % 128 != 0 and BB != B_pad:
        BB = B_pad
    L = BB * HW
    n_blk = B_pad // BB
    off_max = (K - 1) * W + (K - 1)
    Lv = L - off_max               # window covering every valid conv output position

    # --- layout-only glue (single cheap transpose; x crosses HBM once, no im2col) ---
    if B_pad != B:
        x_nchw = jnp.pad(x_nchw, ((0, B_pad - B), (0, 0), (0, 0), (0, 0)))
    # channel-major with batch folded into the position/lane axis:
    #   x2[c, b*H*W + i*W + j] = x[b, c, i, j]
    x2 = jnp.transpose(x_nchw, (1, 0, 2, 3)).reshape(C, B_pad * HW).astype(compute_dtype)

    # weights (F2,C,K,K) -> (K*K, F2, C): one small (F2, C) matrix per tap.
    w2 = jnp.transpose(weights, (2, 3, 0, 1)).reshape(KK, F2, C).astype(compute_dtype)
    b2 = biases.reshape(F2, 1).astype(jnp.float32)

    # Segment/validity matrix (identical for every grid step, so it is DMA'd once):
    # seg[p, b] = 1 iff position p lies in local batch b and is a valid conv output.
    p = jnp.arange(Lv)
    i = (p % HW) // W
    j = p % W
    valid = (i < Ho) & (j < Wo)
    seg = (((p[:, None] // HW) == jnp.arange(BB)[None, :]) &
           valid[:, None]).astype(jnp.float32)                         # (Lv, BB)

    inv_2p = 0.5 / float(Ho * Wo)
    kernel = functools.partial(_rcf_kernel, W=W, K=K, F2=F2, Lv=Lv, inv_2p=inv_2p)
    out3 = pl.pallas_call(
        kernel,
        out_shape=jax.ShapeDtypeStruct((n_blk, 2 * F2, BB), jnp.float32),
        grid_spec=pltpu.PrefetchScalarGridSpec(
            num_scalar_prefetch=0,
            grid=(n_blk,),
            in_specs=[
                pl.BlockSpec((C, L), lambda b: (0, b)),
                pl.BlockSpec((KK, F2, C), lambda b: (0, 0, 0)),
                pl.BlockSpec((F2, 1), lambda b: (0, 0)),
                pl.BlockSpec((Lv, BB), lambda b: (0, 0)),
            ],
            out_specs=pl.BlockSpec((1, 2 * F2, BB), lambda b: (b, 0, 0)),
        ),
        compiler_params=pltpu.CompilerParams(
            dimension_semantics=("parallel",)),
    )(x2, w2, b2, seg)

    # (n_blk, 2*F2, BB) -> (B, 2*F2); output is tiny, XLA-side reshuffle is negligible.
    out = jnp.transpose(out3, (0, 2, 1)).reshape(B_pad, 2 * F2)[:B]
    # Match torch's squeeze() behaviour: a single example returns a 1-D feature vector.
    return out[0] if B == 1 else out


def rcf_reference(x_nchw, weights, biases):
    """Pure-JAX f32 reference (mirrors the PyTorch forward)."""
    conv = lax.conv_general_dilated(
        x_nchw, weights, window_strides=(1, 1), padding="VALID",
        dimension_numbers=("NCHW", "OIHW", "NCHW"))
    conv = conv + biases[None, :, None, None]
    pos = jnp.maximum(conv, 0.0).mean(axis=(2, 3))
    neg = jnp.maximum(-conv, 0.0).mean(axis=(2, 3))
    return jnp.concatenate([pos, neg], axis=1)


if __name__ == "__main__":
    # Module config: in_channels=4, features=16 (F/2=8), kernel_size=3, bias=-1.0
    in_channels, features, kernel_size, bias = 4, 16, 3, -1.0
    B, H, W = 2, 16, 16

    key = jax.random.PRNGKey(0)
    kx, kw = jax.random.split(key)
    x = jax.random.normal(kx, (B, in_channels, H, W), dtype=jnp.float32)
    # Deterministic "random" conv weights (stand-in for torch.randn buffer).
    weights = jax.random.normal(
        kw, (features // 2, in_channels, kernel_size, kernel_size), dtype=jnp.float32)
    biases = jnp.full((features // 2,), bias, dtype=jnp.float32)

    rcf = jax.jit(rcf_forward, static_argnames=("block_batch", "compute_dtype"))
    out = jax.block_until_ready(rcf(x, weights, biases))
    ref = jax.block_until_ready(rcf_reference(x, weights, biases))

    assert out.shape == (B, features), out.shape
    # bf16 MXU operands (f32 accumulation) -> loosened tolerance vs. the f32 reference.
    assert jnp.allclose(out, ref, rtol=2e-2, atol=2e-2), (out, ref)

    print("KERNEL_OK")
</pallas_src>

<mosaic_0001>
module attributes {stable_mosaic.version = 11 : i64} {
  func.func @_rcf_kernel(%arg0: i32, %arg1: memref<4x512xbf16, #tpu.memory_space<vmem>>, %arg2: memref<9x8x4xbf16, #tpu.memory_space<vmem>>, %arg3: memref<8x1xf32, #tpu.memory_space<vmem>>, %arg4: memref<478x2xf32, #tpu.memory_space<vmem>>, %arg5: memref<1x16x2xf32, #tpu.memory_space<vmem>>) attributes {dimension_semantics = [#tpu.dimension_semantics<parallel>], iteration_bounds = array<i64: 1>, scalar_prefetch = 0 : i64, scratch_operands = 0 : i64, tpu.core_type = #tpu.core_type<tc>, window_params = [{transform_indices = @transform_0, window_bounds = array<i64: 4, 512>}, {pipeline_mode = #tpu.pipeline_mode<synchronous>, transform_indices = @transform_1, window_bounds = array<i64: 9, 8, 4>}, {pipeline_mode = #tpu.pipeline_mode<synchronous>, transform_indices = @transform_2, window_bounds = array<i64: 8, 1>}, {pipeline_mode = #tpu.pipeline_mode<synchronous>, transform_indices = @transform_3, window_bounds = array<i64: 478, 2>}, {transform_indices = @transform_4, window_bounds = array<i64: 1, 16, 2>}]} {
    %c0 = arith.constant 0 : index
    %c0_0 = arith.constant 0 : index
    %0 = vector.load %arg1[%c0, %c0_0] : memref<4x512xbf16, #tpu.memory_space<vmem>>, vector<4x512xbf16>
    %1 = vector.extract_strided_slice %0 {offsets = [0, 0], sizes = [4, 478], strides = [1, 1]} : vector<4x512xbf16> to vector<4x478xbf16>
    %c0_1 = arith.constant 0 : index
    %c0_2 = arith.constant 0 : index
    %c0_3 = arith.constant 0 : index
    %2 = vector.load %arg2[%c0_1, %c0_2, %c0_3] : memref<9x8x4xbf16, #tpu.memory_space<vmem>>, vector<1x8x4xbf16>
    %3 = vector.shape_cast %2 : vector<1x8x4xbf16> to vector<8x4xbf16>
    %cst = arith.constant dense<0.000000e+00> : vector<8x478xf32>
    %4 = tpu.matmul %3, %1, %cst {dimension_numbers = #tpu.dot_dimension_numbers<[1], [0], [0], [1], [0, 0, 1, 1], [], []>} : vector<8x4xbf16>, vector<4x478xbf16>, vector<8x478xf32> -> vector<8x478xf32>
    %5 = vector.extract_strided_slice %0 {offsets = [0, 1], sizes = [4, 478], strides = [1, 1]} : vector<4x512xbf16> to vector<4x478xbf16>
    %c1 = arith.constant 1 : index
    %c0_4 = arith.constant 0 : index
    %c0_5 = arith.constant 0 : index
    %6 = vector.load %arg2[%c1, %c0_4, %c0_5] : memref<9x8x4xbf16, #tpu.memory_space<vmem>>, vector<1x8x4xbf16>
    %7 = vector.shape_cast %6 : vector<1x8x4xbf16> to vector<8x4xbf16>
    %cst_6 = arith.constant dense<0.000000e+00> : vector<8x478xf32>
    %8 = tpu.matmul %7, %5, %cst_6 {dimension_numbers = #tpu.dot_dimension_numbers<[1], [0], [0], [1], [0, 0, 1, 1], [], []>} : vector<8x4xbf16>, vector<4x478xbf16>, vector<8x478xf32> -> vector<8x478xf32>
    %9 = arith.addf %4, %8 : vector<8x478xf32>
    %10 = vector.extract_strided_slice %0 {offsets = [0, 2], sizes = [4, 478], strides = [1, 1]} : vector<4x512xbf16> to vector<4x478xbf16>
    %c2 = arith.constant 2 : index
    %c0_7 = arith.constant 0 : index
    %c0_8 = arith.constant 0 : index
    %11 = vector.load %arg2[%c2, %c0_7, %c0_8] : memref<9x8x4xbf16, #tpu.memory_space<vmem>>, vector<1x8x4xbf16>
    %12 = vector.shape_cast %11 : vector<1x8x4xbf16> to vector<8x4xbf16>
    %cst_9 = arith.constant dense<0.000000e+00> : vector<8x478xf32>
    %13 = tpu.matmul %12, %10, %cst_9 {dimension_numbers = #tpu.dot_dimension_numbers<[1], [0], [0], [1], [0, 0, 1, 1], [], []>} : vector<8x4xbf16>, vector<4x478xbf16>, vector<8x478xf32> -> vector<8x478xf32>
    %14 = arith.addf %9, %13 : vector<8x478xf32>
    %15 = vector.extract_strided_slice %0 {offsets = [0, 16], sizes = [4, 478], strides = [1, 1]} : vector<4x512xbf16> to vector<4x478xbf16>
    %c3 = arith.constant 3 : index
    %c0_10 = arith.constant 0 : index
    %c0_11 = arith.constant 0 : index
    %16 = vector.load %arg2[%c3, %c0_10, %c0_11] : memref<9x8x4xbf16, #tpu.memory_space<vmem>>, vector<1x8x4xbf16>
    %17 = vector.shape_cast %16 : vector<1x8x4xbf16> to vector<8x4xbf16>
    %cst_12 = arith.constant dense<0.000000e+00> : vector<8x478xf32>
    %18 = tpu.matmul %17, %15, %cst_12 {dimension_numbers = #tpu.dot_dimension_numbers<[1], [0], [0], [1], [0, 0, 1, 1], [], []>} : vector<8x4xbf16>, vector<4x478xbf16>, vector<8x478xf32> -> vector<8x478xf32>
    %19 = arith.addf %14, %18 : vector<8x478xf32>
    %20 = vector.extract_strided_slice %0 {offsets = [0, 17], sizes = [4, 478], strides = [1, 1]} : vector<4x512xbf16> to vector<4x478xbf16>
    %c4 = arith.constant 4 : index
    %c0_13 = arith.constant 0 : index
    %c0_14 = arith.constant 0 : index
    %21 = vector.load %arg2[%c4, %c0_13, %c0_14] : memref<9x8x4xbf16, #tpu.memory_space<vmem>>, vector<1x8x4xbf16>
    %22 = vector.shape_cast %21 : vector<1x8x4xbf16> to vector<8x4xbf16>
    %cst_15 = arith.constant dense<0.000000e+00> : vector<8x478xf32>
    %23 = tpu.matmul %22, %20, %cst_15 {dimension_numbers = #tpu.dot_dimension_numbers<[1], [0], [0], [1], [0, 0, 1, 1], [], []>} : vector<8x4xbf16>, vector<4x478xbf16>, vector<8x478xf32> -> vector<8x478xf32>
    %24 = arith.addf %19, %23 : vector<8x478xf32>
    %25 = vector.extract_strided_slice %0 {offsets = [0, 18], sizes = [4, 478], strides = [1, 1]} : vector<4x512xbf16> to vector<4x478xbf16>
    %c5 = arith.constant 5 : index
    %c0_16 = arith.constant 0 : index
    %c0_17 = arith.constant 0 : index
    %26 = vector.load %arg2[%c5, %c0_16, %c0_17] : memref<9x8x4xbf16, #tpu.memory_space<vmem>>, vector<1x8x4xbf16>
    %27 = vector.shape_cast %26 : vector<1x8x4xbf16> to vector<8x4xbf16>
    %cst_18 = arith.constant dense<0.000000e+00> : vector<8x478xf32>
    %28 = tpu.matmul %27, %25, %cst_18 {dimension_numbers = #tpu.dot_dimension_numbers<[1], [0], [0], [1], [0, 0, 1, 1], [], []>} : vector<8x4xbf16>, vector<4x478xbf16>, vector<8x478xf32> -> vector<8x478xf32>
    %29 = arith.addf %24, %28 : vector<8x478xf32>
    %30 = vector.extract_strided_slice %0 {offsets = [0, 32], sizes = [4, 478], strides = [1, 1]} : vector<4x512xbf16> to vector<4x478xbf16>
    %c6 = arith.constant 6 : index
    %c0_19 = arith.constant 0 : index
    %c0_20 = arith.constant 0 : index
    %31 = vector.load %arg2[%c6, %c0_19, %c0_20] : memref<9x8x4xbf16, #tpu.memory_space<vmem>>, vector<1x8x4xbf16>
    %32 = vector.shape_cast %31 : vector<1x8x4xbf16> to vector<8x4xbf16>
    %cst_21 = arith.constant dense<0.000000e+00> : vector<8x478xf32>
    %33 = tpu.matmul %32, %30, %cst_21 {dimension_numbers = #tpu.dot_dimension_numbers<[1], [0], [0], [1], [0, 0, 1, 1], [], []>} : vector<8x4xbf16>, vector<4x478xbf16>, vector<8x478xf32> -> vector<8x478xf32>
    %34 = arith.addf %29, %33 : vector<8x478xf32>
    %35 = vector.extract_strided_slice %0 {offsets = [0, 33], sizes = [4, 478], strides = [1, 1]} : vector<4x512xbf16> to vector<4x478xbf16>
    %c7 = arith.constant 7 : index
    %c0_22 = arith.constant 0 : index
    %c0_23 = arith.constant 0 : index
    %36 = vector.load %arg2[%c7, %c0_22, %c0_23] : memref<9x8x4xbf16, #tpu.memory_space<vmem>>, vector<1x8x4xbf16>
    %37 = vector.shape_cast %36 : vector<1x8x4xbf16> to vector<8x4xbf16>
    %cst_24 = arith.constant dense<0.000000e+00> : vector<8x478xf32>
    %38 = tpu.matmul %37, %35, %cst_24 {dimension_numbers = #tpu.dot_dimension_numbers<[1], [0], [0], [1], [0, 0, 1, 1], [], []>} : vector<8x4xbf16>, vector<4x478xbf16>, vector<8x478xf32> -> vector<8x478xf32>
    %39 = arith.addf %34, %38 : vector<8x478xf32>
    %40 = vector.extract_strided_slice %0 {offsets = [0, 34], sizes = [4, 478], strides = [1, 1]} : vector<4x512xbf16> to vector<4x478xbf16>
    %c8 = arith.constant 8 : index
    %c0_25 = arith.constant 0 : index
    %c0_26 = arith.constant 0 : index
    %41 = vector.load %arg2[%c8, %c0_25, %c0_26] : memref<9x8x4xbf16, #tpu.memory_space<vmem>>, vector<1x8x4xbf16>
    %42 = vector.shape_cast %41 : vector<1x8x4xbf16> to vector<8x4xbf16>
    %cst_27 = arith.constant dense<0.000000e+00> : vector<8x478xf32>
    %43 = tpu.matmul %42, %40, %cst_27 {dimension_numbers = #tpu.dot_dimension_numbers<[1], [0], [0], [1], [0, 0, 1, 1], [], []>} : vector<8x4xbf16>, vector<4x478xbf16>, vector<8x478xf32> -> vector<8x478xf32>
    %44 = arith.addf %39, %43 : vector<8x478xf32>
    %c0_28 = arith.constant 0 : index
    %c0_29 = arith.constant 0 : index
    %45 = vector.load %arg3[%c0_28, %c0_29] : memref<8x1xf32, #tpu.memory_space<vmem>>, vector<8x1xf32>
    %46 = vector.broadcast %45 : vector<8x1xf32> to vector<8x478xf32>
    %47 = arith.addf %44, %46 : vector<8x478xf32>
    %48 = math.absf %47 : vector<8x478xf32>
    %49 = tpu.concatenate %47, %48 in 0 : vector<8x478xf32>, vector<8x478xf32> -> vector<16x478xf32>
    %c0_30 = arith.constant 0 : index
    %c0_31 = arith.constant 0 : index
    %50 = vector.load %arg4[%c0_30, %c0_31] : memref<478x2xf32, #tpu.memory_space<vmem>>, vector<478x2xf32>
    %cst_32 = arith.constant dense<0.000000e+00> : vector<16x2xf32>
    %51 = tpu.matmul %49, %50, %cst_32 {dimension_numbers = #tpu.dot_dimension_numbers<[1], [0], [0], [1], [0, 0, 1, 1], [], []>} : vector<16x478xf32>, vector<478x2xf32>, vector<16x2xf32> -> vector<16x2xf32>
    %52 = vector.extract_strided_slice %51 {offsets = [0, 0], sizes = [8, 2], strides = [1, 1]} : vector<16x2xf32> to vector<8x2xf32>
    %53 = vector.extract_strided_slice %51 {offsets = [8, 0], sizes = [8, 2], strides = [1, 1]} : vector<16x2xf32> to vector<8x2xf32>
    %54 = arith.addf %53, %52 : vector<8x2xf32>
    %cst_33 = arith.constant 0.00255102036 : f32
    %55 = vector.broadcast %cst_33 : f32 to vector<8x2xf32>
    %56 = arith.mulf %54, %55 : vector<8x2xf32>
    %57 = arith.subf %53, %52 : vector<8x2xf32>
    %cst_34 = arith.constant 0.00255102036 : f32
    %58 = vector.broadcast %cst_34 : f32 to vector<8x2xf32>
    %59 = arith.mulf %57, %58 : vector<8x2xf32>
    %60 = tpu.concatenate %56, %59 in 0 : vector<8x2xf32>, vector<8x2xf32> -> vector<16x2xf32>
    %c0_35 = arith.constant 0 : index
    %c0_36 = arith.constant 0 : index
    %c0_37 = arith.constant 0 : index
    %61 = vector.load %arg5[%c0_35, %c0_36, %c0_37] : memref<1x16x2xf32, #tpu.memory_space<vmem>>, vector<1x16x2xf32>
    %62 = vector.shape_cast %61 : vector<1x16x2xf32> to vector<16x2xf32>
    %63 = vector.shape_cast %60 : vector<16x2xf32> to vector<1x16x2xf32>
    tpu.vector_store %arg5[%c0_35, %c0_36, %c0_37], %63 {strides = array<i32>} : memref<1x16x2xf32, #tpu.memory_space<vmem>>, vector<1x16x2xf32>,
    return
  }
  func.func @transform_0(%arg0: i32) -> (i32, i32) {
    %c0_i32 = arith.constant 0 : i32
    %c0_i32_0 = arith.constant 0 : i32
    return %c0_i32, %arg0 : i32, i32
  }
  func.func @transform_1(%arg0: i32) -> (i32, i32, i32) {
    %c0_i32 = arith.constant 0 : i32
    %c0_i32_0 = arith.constant 0 : i32
    %c0_i32_1 = arith.constant 0 : i32
    %c0_i32_2 = arith.constant 0 : i32
    return %c0_i32, %c0_i32_0, %c0_i32_1 : i32, i32, i32
  }
  func.func @transform_2(%arg0: i32) -> (i32, i32) {
    %c0_i32 = arith.constant 0 : i32
    %c0_i32_0 = arith.constant 0 : i32
    %c0_i32_1 = arith.constant 0 : i32
    return %c0_i32, %c0_i32_0 : i32, i32
  }
  func.func @transform_3(%arg0: i32) -> (i32, i32) {
    %c0_i32 = arith.constant 0 : i32
    %c0_i32_0 = arith.constant 0 : i32
    %c0_i32_1 = arith.constant 0 : i32
    return %c0_i32, %c0_i32_0 : i32, i32
  }
  func.func @transform_4(%arg0: i32) -> (i32, i32, i32) {
    %c0_i32 = arith.constant 0 : i32
    %c0_i32_0 = arith.constant 0 : i32
    %c0_i32_1 = arith.constant 0 : i32
    return %arg0, %c0_i32, %c0_i32_0 : i32, i32, i32
  }
}

</mosaic_0001>

<bundles_post_ra>
// kernel: rcf_forward.1
= control target key start
LH: loop header
LB: loop body
LE: loop exit
PB: predicated region body
PF: predicated region fallthrough
CT: control target
= control target key end

     0   :  { %v27_v0 = vlaneseq  ;;  %v1473_v2 = vmov 1983009808   ;;  %v1474_v7 = vmov 0   ;;  %vm56_vm0 = vcmask 1041408   ;;  %s1475_s17 = smov 127   ;;  %s1476_s19 = smov 126   ;;  %s1873_s0 = inlined_call_operand.vmem [shape: bf16[4,512], index: 0, kind: input, shape index: {}]   ;;  %s1874_s1 = inlined_call_operand.vmem [shape: bf16[9,8,4], index: 1, kind: input, shape index: {}]   ;;  %s1875_s2 = inlined_call_operand.vmem [shape: f32[8,1], index: 2, kind: input, shape index: {}]   ;;  %s1876_s3 = inlined_call_operand.vmem [shape: f32[478,2], index: 3, kind: input, shape index: {}]   ;;  %s1877_s4 = inlined_call_operand.vmem [shape: f32[1,16,2], index: 4, kind: output, shape index: {}]  }
   0x1   :  { %v18_v1 = vld [vmem:[%s1873_s0] sm:$0xff]  ;;  %v25_v3 = vunpack.c.l.s4 %v1473_v2  ;;  %101 = vmatprep.mubr.bf16.mxu0 %v1474_v7  ;;  %239 = vmatprep.mubr.bf16.mxu1 %v1474_v7  ;;  %vm52_vm1 = vcmask 31744   ;;  %s1477_s20 = smov 112   ;;  %s1478_s21 = smov 111   ;;  %vm48_vm2 = vcmask 1039360   ;;  %vm258_vm3 = vcmask 1031168  }
   0x2   :  { %v28_v4 = vshrl.u32 %v27_v0, 7  ;;  %v23_v6 = vcombine.high %v18_v1, %v18_v1  ;;  %1471 = vset.pattern.permute.xlu0 %v1474_v7  ;;  %v1528_v14 = vld [vmem:[%s1874_s1] sm:$0xf]  ;;  %s1479_s22 = smov 110   ;;  %s1480_s23 = smov 96   ;;  %vm373_vm4 = vcmask 916480  }
   0x3   :  { %v26_v5 = vunpack.c.0.s8 %v25_v3  ;;  %s1481_s24 = smov 95   ;;  %s1482_s25 = smov 94   ;;  %v1053_v15 = vld [vmem:[%s1875_s2] sm:$0xff]  ;;  %v1308_v32 = vld [vmem:[%s1874_s1 + $0x8] sm:$0xf]  ;;  %vm488_vm5 = vcmask 908288  }
   0x4   :  { %v1299_v24 = vld [vmem:[%s1874_s1 + $0x4] sm:$0xf]  ;;  %v1313_v42 = vld [vmem:[%s1874_s1 + $0xc] sm:$0xf]  ;;  %v1318_v52 = vld [vmem:[%s1874_s1 + $0x10] sm:$0xf] }
   0x5   :  { %v29_v8 = vsub.s32 %v26_v5, %v28_v4  ;;  %vm603_vm6 = vcmask 900096   ;;  %v1323_v62 = vld [vmem:[%s1874_s1 + $0x14] sm:$0xf]  ;;  %vm718_vm7 = vcmask 785408   ;;  %vm833_vm8 = vcmask 777216  }
   0x6   :  { %vm948_vm9 = vcmask 769024   ;;  %vm1134_vm10 = vcmask 1045504   ;;  %vm1484_vm11 = vmmov 1   ;;  %vm1292_vm13 = vcmask 15360  }
   0x7   :  { %v1516_v9 = vrot.slane %v18_v1, %v29_v8  ;;  %v37_v10 = vrot.slane %v23_v6, %v29_v8  ;;  %vm1457_vm12 = vmpackc.low %vm1134_vm10, %vm1484_vm11 }
   0x9   :  { %40 = vrot.lane.b32.xlu0 %v1516_v9, %s1475_s17  ;;  %44 = vrot.lane.b32.xlu1 %v37_v10, %s1475_s17  ;;  %v1521_v11 = vcombine.high %v1516_v9, %v1516_v9  ;;  %v39_v12 = vcombine.high %v37_v10, %v37_v10  ;;  %v161_v13 = vsel %vm56_vm0, %v37_v10, 0  ;;  %v155_v35 = vsel %vm56_vm0, %v1516_v9, 0 }
   0xb   :  { %1306 = vmatprep.subr.msk.bf16.mxu1 %vm56_vm0, %v39_v12 }
   0xc   :  { %208 = vmatpush1.bf16.msra.mxu1 %v161_v13 }
   0xd   :  { %42 = vrot.lane.b32.xlu0 %v1521_v11, %s1475_s17  ;;  %46 = vrot.lane.b32.xlu1 %v39_v12, %s1475_s17 }
   0xf   :  { %1307 = vmatmul.mubr.msk.bf16.vlgmr.msra.gmra.mrb[0].mxu1 %vm52_vm1, %v1528_v14 }
  0x10   :  { %350 = vmatprep.mubr.bf16.mxu1 %v1474_v7 }
  0x11   :  { %250 = vrot.lane.b32.xlu0 %v1516_v9, %s1476_s19  ;;  %252 = vrot.lane.b32.xlu1 %v1521_v11, %s1476_s19 }
  0x15   :  { %254 = vrot.lane.b32.xlu0 %v37_v10, %s1476_s19  ;;  %256 = vrot.lane.b32.xlu1 %v39_v12, %s1476_s19 }
  0x19   :  { %365 = vrot.lane.b32.xlu0 %v1516_v9, %s1477_s20  ;;  %367 = vrot.lane.b32.xlu1 %v1521_v11, %s1477_s20 }
  0x1d   :  { %369 = vrot.lane.b32.xlu0 %v37_v10, %s1477_s20  ;;  %371 = vrot.lane.b32.xlu1 %v39_v12, %s1477_s20 }
  0x21   :  { %480 = vrot.lane.b32.xlu0 %v1516_v9, %s1478_s21  ;;  %482 = vrot.lane.b32.xlu1 %v1521_v11, %s1478_s21 }
  0x25   :  { %484 = vrot.lane.b32.xlu0 %v37_v10, %s1478_s21  ;;  %486 = vrot.lane.b32.xlu1 %v39_v12, %s1478_s21 }
  0x29   :  { %595 = vrot.lane.b32.xlu0 %v1516_v9, %s1479_s22  ;;  %597 = vrot.lane.b32.xlu1 %v1521_v11, %s1479_s22 }
  0x2d   :  { %599 = vrot.lane.b32.xlu0 %v37_v10, %s1479_s22  ;;  %601 = vrot.lane.b32.xlu1 %v39_v12, %s1479_s22 }
  0x31   :  { %710 = vrot.lane.b32.xlu0 %v1516_v9, %s1480_s23  ;;  %712 = vrot.lane.b32.xlu1 %v1521_v11, %s1480_s23 }
  0x35   :  { %714 = vrot.lane.b32.xlu0 %v37_v10, %s1480_s23  ;;  %716 = vrot.lane.b32.xlu1 %v39_v12, %s1480_s23 }
  0x39   :  { %825 = vrot.lane.b32.xlu0 %v1516_v9, %s1481_s24  ;;  %827 = vrot.lane.b32.xlu1 %v1521_v11, %s1481_s24 }
  0x3d   :  { %829 = vrot.lane.b32.xlu0 %v37_v10, %s1481_s24  ;;  %831 = vrot.lane.b32.xlu1 %v39_v12, %s1481_s24 }
  0x41   :  { %940 = vrot.lane.b32.xlu0 %v1516_v9, %s1482_s25  ;;  %942 = vrot.lane.b32.xlu1 %v1521_v11, %s1482_s25  ;;  %v1328_v9 = vld [vmem:[%s1874_s1 + $0x18] sm:$0xf] }
  0x45   :  { %944 = vrot.lane.b32.xlu0 %v37_v10, %s1482_s25  ;;  %946 = vrot.lane.b32.xlu1 %v39_v12, %s1482_s25 }
  0x49   :  { %1056 = vperm.xlu0 %1471, %v1053_v15  }
  0x7b   :  { %v41_v16 = vpop.permute.xlu0 %40  ;;  %v45_v17 = vpop.permute.xlu1 %44 }
  0x7f   :  { %v43_v18 = vpop.permute.xlu0 %42  ;;  %v47_v19 = vpop.permute.xlu1 %46 }
  0x80   :  { %v50_v20 = vsel %vm48_vm2, %v43_v18, %v45_v17  ;;  %v49_v21 = vsel %vm48_vm2, %v41_v16, %v43_v18  ;;  %v51_v23 = vsel %vm48_vm2, %v45_v17, %v47_v19 }
  0x81   :  { %1300 = vmatprep.subr.msk.bf16.mxu0 %vm56_vm0, %v50_v20  ;;  %v58_v22 = vsel %vm56_vm0, %v49_v21, 0  ;;  %v64_v27 = vsel %vm56_vm0, %v51_v23, 0 }
  0x82   :  { %70 = vmatpush1.bf16.msra.mxu0 %v58_v22 }
  0x83   :  { %v251_v25 = vpop.permute.xlu0 %250  ;;  %v253_v26 = vpop.permute.xlu1 %252  ;;  %1302 = vmatprep.subr.msk.bf16.mxu0 %vm56_vm0, %v47_v19  ;;  %v1333_v19 = vld [vmem:[%s1874_s1 + $0x1c] sm:$0xf] }
  0x84   :  { %v259_v39 = vsel %vm258_vm3, %v251_v25, %v253_v26 }
  0x85   :  { %1301 = vmatmul.mubr.msk.bf16.vlgmr.msra.gmra.mrb[0].mxu0 %vm52_vm1, %v1299_v24  ;;  %v266_v43 = vsel %vm56_vm0, %v259_v39, 0 }
  0x86   :  { %111 = vmatpush1.bf16.msra.mxu0 %v64_v27  ;;  %142 = vmatprep.mubr.bf16.mxu0 %v1474_v7 }
  0x87   :  { %v255_v28 = vpop.permute.xlu0 %254  ;;  %v257_v29 = vpop.permute.xlu1 %256  ;;  %1304 = vmatprep.subr.msk.bf16.mxu0 %vm56_vm0, %v1521_v11 }
  0x88   :  { %v261_v30 = vsel %vm258_vm3, %v255_v28, %v257_v29  ;;  %1311 = vmatprep.subr.msk.bf16.mxu1 %vm56_vm0, %v257_v29  ;;  %v260_v36 = vsel %vm258_vm3, %v253_v26, %v255_v28  ;;  %v1338_v29 = vld [vmem:[%s1874_s1 + $0x20] sm:$0xf] }
  0x89   :  { %v272_v31 = vsel %vm56_vm0, %v261_v30, 0 }
  0x8a   :  { %319 = vmatpush1.bf16.msra.mxu1 %v272_v31 }
  0x8b   :  { %v366_v33 = vpop.permute.xlu0 %365  ;;  %v368_v34 = vpop.permute.xlu1 %367 }
  0x8c   :  { %v374_v49 = vsel %vm373_vm4, %v366_v33, %v368_v34 }
  0x8d   :  { %1303 = vmatmul.mubr.msk.bf16.vlgmr.msra.gmra.mrb[4].mxu0 %vm52_vm1, %v1299_v24  ;;  %1312 = vmatmul.mubr.msk.bf16.vlgmr.msra.gmra.mrb[4].mxu1 %vm52_vm1, %v1308_v32  ;;  %v381_v53 = vsel %vm56_vm0, %v374_v49, 0 }
  0x8e   :  { %167 = vmatpush1.bf16.msra.mxu0 %v155_v35  ;;  %198 = vmatprep.mubr.bf16.mxu0 %v1474_v7  ;;  %v1099_v35 = vld [vmem:[%s1876_s3 + $0x100] sm:$0xff] }
  0x8f   :  { %v370_v37 = vpop.permute.xlu0 %369  ;;  %v372_v38 = vpop.permute.xlu1 %371  ;;  %1309 = vmatprep.subr.msk.bf16.mxu0 %vm56_vm0, %v260_v36  ;;  %465 = vmatprep.mubr.bf16.mxu1 %v1474_v7  ;;  %v1100_v36 = vld [vmem:[%s1876_s3 + $0x108] sm:$0xff] }
  0x90   :  { %v376_v40 = vsel %vm373_vm4, %v370_v37, %v372_v38  ;;  %1316 = vmatprep.subr.msk.bf16.mxu1 %vm56_vm0, %v372_v38  ;;  %v375_v46 = vsel %vm373_vm4, %v368_v34, %v370_v37  ;;  %v1483_v34 = vmov 0.0|0.0   ;;  %v1417_v37 = vpack.c.bf16 %v1100_v36, %v1099_v35  ;;  %v1102_v38 = vld [vmem:[%s1876_s3 + $0x118] sm:$0xff]  ;;  %v1073_v36 = vld [vmem:[%s1876_s3 + $0x30] sm:$0xff] }
  0x91   :  { %v387_v41 = vsel %vm56_vm0, %v376_v40, 0 }
  0x92   :  { %434 = vmatpush1.bf16.msra.mxu1 %v387_v41 }
  0x93   :  { %v481_v44 = vpop.permute.xlu0 %480  ;;  %v483_v45 = vpop.permute.xlu1 %482 }
  0x94   :  { %v489_v59 = vsel %vm488_vm5, %v481_v44, %v483_v45  ;;  %v1103_v44 = vld [vmem:[%s1876_s3 + $0x120] sm:$0xff] }
  0x95   :  { %1305 = vmatmul.mubr.msk.bf16.vlgmr.msra.gmra.mrb[8].mxu0 %vm52_vm1, %v1528_v14  ;;  %1317 = vmatmul.mubr.msk.bf16.vlgmr.msra.gmra.mrb[8].mxu1 %vm52_vm1, %v1313_v42  ;;  %v496_v63 = vsel %vm56_vm0, %v489_v59, 0  ;;  %v1113_v59 = vld [vmem:[%s1876_s3 + $0x170] sm:$0xff] }
  0x96   :  { %278 = vmatpush1.bf16.msra.mxu0 %v266_v43  ;;  %309 = vmatprep.mubr.bf16.mxu0 %v1474_v7 }
  0x97   :  { %v485_v47 = vpop.permute.xlu0 %484  ;;  %v487_v48 = vpop.permute.xlu1 %486  ;;  %1314 = vmatprep.subr.msk.bf16.mxu0 %vm56_vm0, %v375_v46  ;;  %580 = vmatprep.mubr.bf16.mxu1 %v1474_v7 }
  0x98   :  { %v491_v50 = vsel %vm488_vm5, %v485_v47, %v487_v48  ;;  %1321 = vmatprep.subr.msk.bf16.mxu1 %vm56_vm0, %v487_v48  ;;  %v490_v56 = vsel %vm488_vm5, %v483_v45, %v485_v47  ;;  %v1104_v45 = vld [vmem:[%s1876_s3 + $0x128] sm:$0xff]  ;;  %v1105_v47 = vld [vmem:[%s1876_s3 + $0x130] sm:$0xff]  ;;  %v1106_v48 = vld [vmem:[%s1876_s3 + $0x138] sm:$0xff] }
  0x99   :  { %v502_v51 = vsel %vm56_vm0, %v491_v50, 0  ;;  %v1423_v46 = vpack.c.bf16 %v1104_v45, %v1103_v44  ;;  %v1426_v49 = vpack.c.bf16 %v1106_v48, %v1105_v47  ;;  %v1107_v50 = vld [vmem:[%s1876_s3 + $0x140] sm:$0xff]  ;;  %v1092_v44 = vld [vmem:[%s1876_s3 + $0xc8] sm:$0xff]  ;;  %v1093_v48 = vld [vmem:[%s1876_s3 + $0xd0] sm:$0xff] }
  0x9a   :  { %549 = vmatpush1.bf16.msra.mxu1 %v502_v51  ;;  %v1108_v51 = vld [vmem:[%s1876_s3 + $0x148] sm:$0xff]  ;;  %v1075_v45 = vld [vmem:[%s1876_s3 + $0x40] sm:$0xff] }
  0x9b   :  { %v596_v54 = vpop.permute.xlu0 %595  ;;  %v598_v55 = vpop.permute.xlu1 %597 }
  0x9c   :  { %v604_v5 = vsel %vm603_vm6, %v596_v54, %v598_v55  ;;  %v1110_v54 = vld [vmem:[%s1876_s3 + $0x158] sm:$0xff] }
  0x9d   :  { %1310 = vmatmul.mubr.msk.bf16.vlgmr.msra.gmra.mrb[12].mxu0 %vm52_vm1, %v1308_v32  ;;  %1322 = vmatmul.mubr.msk.bf16.vlgmr.msra.gmra.mrb[12].mxu1 %vm52_vm1, %v1318_v52  ;;  %v611_v10 = vsel %vm56_vm0, %v604_v5, 0  ;;  %v1084_v5 = vld [vmem:[%s1876_s3 + $0x88] sm:$0xff] }
  0x9e   :  { %393 = vmatpush1.bf16.msra.mxu0 %v381_v53  ;;  %424 = vmatprep.mubr.bf16.mxu0 %v1474_v7  ;;  %v1109_v53 = vld [vmem:[%s1876_s3 + $0x150] sm:$0xff] }
  0x9f   :  { %v600_v57 = vpop.permute.xlu0 %599  ;;  %v602_v58 = vpop.permute.xlu1 %601  ;;  %1319 = vmatprep.subr.msk.bf16.mxu0 %vm56_vm0, %v490_v56  ;;  %695 = vmatprep.mubr.bf16.mxu1 %v1474_v7  ;;  %v1111_v56 = vld [vmem:[%s1876_s3 + $0x160] sm:$0xff] }
  0xa0   :  { %v606_v60 = vsel %vm603_vm6, %v600_v57, %v602_v58  ;;  %1326 = vmatprep.subr.msk.bf16.mxu1 %vm56_vm0, %v602_v58  ;;  %v605_v2 = vsel %vm603_vm6, %v598_v55, %v600_v57  ;;  %v1432_v55 = vpack.c.bf16 %v1110_v54, %v1109_v53  ;;  %v1112_v57 = vld [vmem:[%s1876_s3 + $0x168] sm:$0xff]  ;;  %v1095_v54 = vld [vmem:[%s1876_s3 + $0xe0] sm:$0xff] }
  0xa1   :  { %v617_v61 = vsel %vm56_vm0, %v606_v60, 0  ;;  %v1435_v58 = vpack.c.bf16 %v1112_v57, %v1111_v56  ;;  %v1114_v60 = vld [vmem:[%s1876_s3 + $0x178] sm:$0xff]  ;;  %v1079_v57 = vld [vmem:[%s1876_s3 + $0x60] sm:$0xff] }
  0xa2   :  { %664 = vmatpush1.bf16.msra.mxu1 %v617_v61  ;;  %v1438_v61 = vpack.c.bf16 %v1114_v60, %v1113_v59  ;;  %v1097_v60 = vld [vmem:[%s1876_s3 + $0xf0] sm:$0xff] }
  0xa3   :  { %v711_v0 = vpop.permute.xlu0 %710  ;;  %v713_v1 = vpop.permute.xlu1 %712 }
  0xa4   :  { %v719_v16 = vsel %vm718_vm7, %v711_v0, %v713_v1 }
  0xa5   :  { %1315 = vmatmul.mubr.msk.bf16.vlgmr.msra.gmra.mrb[16].mxu0 %vm52_vm1, %v1313_v42  ;;  %1327 = vmatmul.mubr.msk.bf16.vlgmr.msra.gmra.mrb[16].mxu1 %vm52_vm1, %v1323_v62  ;;  %v726_v20 = vsel %vm56_vm0, %v719_v16, 0 }
  0xa6   :  { %508 = vmatpush1.bf16.msra.mxu0 %v496_v63  ;;  %539 = vmatprep.mubr.bf16.mxu0 %v1474_v7  ;;  %v1116_v63 = vld [vmem:[%s1876_s3 + $0x188] sm:$0xff] }
  0xa7   :  { %v715_v3 = vpop.permute.xlu0 %714  ;;  %v717_v4 = vpop.permute.xlu1 %716  ;;  %1324 = vmatprep.subr.msk.bf16.mxu0 %vm56_vm0, %v605_v2  ;;  %810 = vmatprep.mubr.bf16.mxu1 %v1474_v7  ;;  %v1118_v2 = vld [vmem:[%s1876_s3 + $0x198] sm:$0xff] }
  0xa8   :  { %v721_v6 = vsel %vm718_vm7, %v715_v3, %v717_v4  ;;  %1331 = vmatprep.subr.msk.bf16.mxu1 %vm56_vm0, %v717_v4  ;;  %v720_v13 = vsel %vm718_vm7, %v713_v1, %v715_v3  ;;  %v1117_v1 = vld [vmem:[%s1876_s3 + $0x190] sm:$0xff]  ;;  %v1083_v4 = vld [vmem:[%s1876_s3 + $0x80] sm:$0xff] }
  0xa9   :  { %v732_v8 = vsel %vm56_vm0, %v721_v6, 0  ;;  %v1444_v3 = vpack.c.bf16 %v1118_v2, %v1117_v1  ;;  %v1384_v6 = vpack.c.bf16 %v1084_v5, %v1083_v4 }
  0xaa   :  { %779 = vmatpush1.bf16.msra.mxu1 %v732_v8  ;;  %v1067_v8 = vld [vmem:[%s1876_s3] sm:$0xff] }
  0xab   :  { %v826_v11 = vpop.permute.xlu0 %825  ;;  %v828_v12 = vpop.permute.xlu1 %827 }
  0xac   :  { %v834_v26 = vsel %vm833_vm8, %v826_v11, %v828_v12 }
  0xad   :  { %1320 = vmatmul.mubr.msk.bf16.vlgmr.msra.gmra.mrb[20].mxu0 %vm52_vm1, %v1318_v52  ;;  %1332 = vmatmul.mubr.msk.bf16.vlgmr.msra.gmra.mrb[20].mxu1 %vm52_vm1, %v1328_v9  ;;  %v841_v30 = vsel %vm56_vm0, %v834_v26, 0  ;;  %v1429_v52 = vpack.c.bf16 %v1108_v51, %v1107_v50  ;;  %v1071_v26 = vld [vmem:[%s1876_s3 + $0x20] sm:$0xff]  ;;  %v1077_v51 = vld [vmem:[%s1876_s3 + $0x50] sm:$0xff] }
  0xae   :  { %623 = vmatpush1.bf16.msra.mxu0 %v611_v10  ;;  %654 = vmatprep.mubr.bf16.mxu0 %v1474_v7  ;;  %v1119_v10 = vld [vmem:[%s1876_s3 + $0x1a0] sm:$0xff] }
  0xaf   :  { %v830_v14 = vpop.permute.xlu0 %829  ;;  %v832_v15 = vpop.permute.xlu1 %831  ;;  %1329 = vmatprep.subr.msk.bf16.mxu0 %vm56_vm0, %v720_v13  ;;  %925 = vmatprep.mubr.bf16.mxu1 %v1474_v7 }
  0xb0   :  { %v836_v17 = vsel %vm833_vm8, %v830_v14, %v832_v15  ;;  %1336 = vmatprep.subr.msk.bf16.mxu1 %vm56_vm0, %v832_v15  ;;  %v835_v23 = vsel %vm833_vm8, %v828_v12, %v830_v14  ;;  %v1120_v12 = vld [vmem:[%s1876_s3 + $0x1a8] sm:$0xff]  ;;  %v1085_v14 = vld [vmem:[%s1876_s3 + $0x90] sm:$0xff]  ;;  %v1086_v15 = vld [vmem:[%s1876_s3 + $0x98] sm:$0xff] }
  0xb1   :  { %v847_v18 = vsel %vm56_vm0, %v836_v17, 0  ;;  %v1447_v13 = vpack.c.bf16 %v1120_v12, %v1119_v10  ;;  %v1388_v16 = vpack.c.bf16 %v1086_v15, %v1085_v14  ;;  %v1069_v17 = vld [vmem:[%s1876_s3 + $0x10] sm:$0xff] }
  0xb2   :  { %894 = vmatpush1.bf16.msra.mxu1 %v847_v18  ;;  %v1070_v18 = vld [vmem:[%s1876_s3 + $0x18] sm:$0xff] }
  0xb3   :  { %v941_v21 = vpop.permute.xlu0 %940  ;;  %v943_v22 = vpop.permute.xlu1 %942 }
  0xb4   :  { %v949_v32 = vsel %vm948_vm9, %v941_v21, %v943_v22  ;;  %v1122_v21 = vld [vmem:[%s1876_s3 + $0x1b8] sm:$0xff] }
  0xb5   :  { %1325 = vmatmul.mubr.msk.bf16.vlgmr.msra.gmra.mrb[24].mxu0 %vm52_vm1, %v1323_v62  ;;  %1337 = vmatmul.mubr.msk.bf16.vlgmr.msra.gmra.mrb[24].mxu1 %vm52_vm1, %v1333_v19  ;;  %v956_v33 = vsel %vm56_vm0, %v949_v32, 0  ;;  %v1115_v62 = vld [vmem:[%s1876_s3 + $0x180] sm:$0xff]  ;;  %v1089_v32 = vld [vmem:[%s1876_s3 + $0xb0] sm:$0xff] }
  0xb6   :  { %738 = vmatpush1.bf16.msra.mxu0 %v726_v20  ;;  %769 = vmatprep.mubr.bf16.mxu0 %v1474_v7  ;;  %v1441_v0 = vpack.c.bf16 %v1116_v63, %v1115_v62  ;;  %v1390_v20 = vpack.c.bf16 %v1070_v18, %v1069_v17  ;;  %v1081_v63 = vld [vmem:[%s1876_s3 + $0x70] sm:$0xff] }
  0xb7   :  { %v945_v24 = vpop.permute.xlu0 %944  ;;  %v947_v25 = vpop.permute.xlu1 %946  ;;  %1334 = vmatprep.subr.msk.bf16.mxu0 %vm56_vm0, %v835_v23  ;;  %1040 = vmatprep.mubr.bf16.mxu1 %v1474_v7  ;;  %v1087_v23 = vld [vmem:[%s1876_s3 + $0xa0] sm:$0xff] }
  0xb8   :  { %v951_v27 = vsel %vm948_vm9, %v945_v24, %v947_v25  ;;  %1341 = vmatprep.subr.msk.bf16.mxu1 %vm56_vm0, %v947_v25  ;;  %v950_v31 = vsel %vm948_vm9, %v943_v22, %v945_v24  ;;  %v1088_v24 = vld [vmem:[%s1876_s3 + $0xa8] sm:$0xff] }
  0xb9   :  { %v962_v28 = vsel %vm56_vm0, %v951_v27, 0  ;;  %v1392_v25 = vpack.c.bf16 %v1088_v24, %v1087_v23  ;;  %v1072_v27 = vld [vmem:[%s1876_s3 + $0x28] sm:$0xff] }
  0xba   :  { %1009 = vmatpush1.bf16.msra.mxu1 %v962_v28  ;;  %v1123_v28 = vld [vmem:[%s1876_s3 + $0x1c0] sm:$0xff] }
  0xbb   :  { %1416 = vmatprep.subr.bf16.mxu1 %v1483_v34 }
  0xbd   :  { %1330 = vmatmul.mubr.msk.bf16.vlgmr.msra.gmra.mrb[28].mxu0 %vm52_vm1, %v1328_v9  ;;  %1342 = vmatmul.mubr.msk.bf16.vlgmr.msra.gmra.mrb[28].mxu1 %vm52_vm1, %v1338_v29  ;;  %v1068_v9 = vld [vmem:[%s1876_s3 + $0x8] sm:$0xff] }
  0xbe   :  { %853 = vmatpush1.bf16.msra.mxu0 %v841_v30  ;;  %884 = vmatprep.mubr.bf16.mxu0 %v1474_v7  ;;  %v1386_v11 = vpack.c.bf16 %v1068_v9, %v1067_v8  ;;  %v1124_v30 = vld [vmem:[%s1876_s3 + $0x1c8] sm:$0xff] }
  0xbf   :  { %1339 = vmatprep.subr.msk.bf16.mxu0 %vm56_vm0, %v950_v31  ;;  %1418 = vmatpush1.bf16.msra.mxu1 %v1417_v37  ;;  %v1453_v31 = vpack.c.bf16 %v1124_v30, %v1123_v28  ;;  %v1074_v37 = vld [vmem:[%s1876_s3 + $0x38] sm:$0xff] }
  0xc0   :  { %1419 = vmatprep.subr.bf16.mxu1 %v1483_v34 }
  0xc5   :  { %1335 = vmatmul.mubr.msk.bf16.vlgmr.msra.gmra.mrb[32].mxu0 %vm52_vm1, %v1333_v19  ;;  %v1121_v19 = vld [vmem:[%s1876_s3 + $0x1b0] sm:$0xff] }
  0xc6   :  { %968 = vmatpush1.bf16.msra.mxu0 %v956_v33  ;;  %999 = vmatprep.mubr.bf16.mxu0 %v1474_v7  ;;  %v1101_v7 = vld [vmem:[%s1876_s3 + $0x110] sm:$0xff]  ;;  %v1450_v22 = vpack.c.bf16 %v1122_v21, %v1121_v19  ;;  %v1090_v33 = vld [vmem:[%s1876_s3 + $0xb8] sm:$0xff] }
  0xc7   :  { %v1420_v40 = vpack.c.bf16 %v1102_v38, %v1101_v7  ;;  %1385 = vmatprep.subr.bf16.mxu0 %v1384_v6  ;;  %v1396_v35 = vpack.c.bf16 %v1090_v33, %v1089_v32  ;;  %v1125_v7 = vld [vmem:[%s1876_s3 + $0x1d0] sm:$0xff]  ;;  %v1398_v38 = vpack.c.bf16 %v1074_v37, %v1073_v36 }
  0xc9   :  { %1421 = vmatpush1.bf16.msra.mxu1 %v1420_v40  ;;  %v1126_v40 = vld [vmem:[%s1876_s3 + $0x1d8] sm:$0x3f] }
  0xca   :  { %1422 = vmatprep.subr.bf16.mxu1 %v1483_v34 }
  0xcd   :  { %1340 = vmatmul.mubr.msk.bf16.vlgmr.msra.gmra.mrb[36].mxu0 %vm52_vm1, %v1338_v29  ;;  %1424 = vmatpush1.bf16.msra.mxu1 %v1423_v46  ;;  %v1394_v29 = vpack.c.bf16 %v1072_v27, %v1071_v26  ;;  %v1076_v46 = vld [vmem:[%s1876_s3 + $0x48] sm:$0xff] }
  0xce   :  { %1425 = vmatprep.subr.bf16.mxu1 %v1483_v34  ;;  %1387 = vmatpush3.bf16.msra.mxu0 %v1386_v11  ;;  %v1402_v47 = vpack.c.bf16 %v1076_v46, %v1075_v45 }
  0xcf   :  { %1389 = vmatprep.subr.bf16.mxu0 %v1388_v16 }
  0xd1   :  { %1427 = vmatpush1.bf16.msra.mxu1 %v1426_v49  ;;  %v1094_v49 = vld [vmem:[%s1876_s3 + $0xd8] sm:$0xff] }
  0xd2   :  { %1428 = vmatprep.subr.bf16.mxu1 %v1483_v34  ;;  %1391 = vmatpush3.bf16.msra.mxu0 %v1390_v20  ;;  %v1404_v50 = vpack.c.bf16 %v1094_v49, %v1093_v48 }
  0xd3   :  { %1393 = vmatprep.subr.bf16.mxu0 %v1392_v25 }
  0xd5   :  { %1430 = vmatpush1.bf16.msra.mxu1 %v1429_v52  ;;  %v1078_v52 = vld [vmem:[%s1876_s3 + $0x58] sm:$0xff] }
  0xd6   :  { %1431 = vmatprep.subr.bf16.mxu1 %v1483_v34  ;;  %1395 = vmatpush3.bf16.msra.mxu0 %v1394_v29  ;;  %v1406_v53 = vpack.c.bf16 %v1078_v52, %v1077_v51 }
  0xd7   :  { %1397 = vmatprep.subr.bf16.mxu0 %v1396_v35 }
  0xd9   :  { %1433 = vmatpush1.bf16.msra.mxu1 %v1432_v55  ;;  %v1096_v55 = vld [vmem:[%s1876_s3 + $0xe8] sm:$0xff] }
  0xda   :  { %1434 = vmatprep.subr.bf16.mxu1 %v1483_v34  ;;  %1399 = vmatpush3.bf16.msra.mxu0 %v1398_v38  ;;  %v1408_v56 = vpack.c.bf16 %v1096_v55, %v1095_v54 }
  0xdd   :  { %1436 = vmatpush1.bf16.msra.mxu1 %v1435_v58  ;;  %v1080_v58 = vld [vmem:[%s1876_s3 + $0x68] sm:$0xff] }
  0xde   :  { %1437 = vmatprep.subr.bf16.mxu1 %v1483_v34  ;;  %v1410_v59 = vpack.c.bf16 %v1080_v58, %v1079_v57 }
  0xe1   :  { %1439 = vmatpush1.bf16.msra.mxu1 %v1438_v61  ;;  %v1098_v61 = vld [vmem:[%s1876_s3 + $0xf8] sm:$0xff] }
  0xe2   :  { %v1679_v39 = vpop.f32.mrb[0].mxu1  ;;  %1440 = vmatprep.subr.bf16.mxu1 %v1483_v34  ;;  %v1412_v62 = vpack.c.bf16 %v1098_v61, %v1097_v60 }
  0xe3   :  { %v1681_v41 = vpop.f32.mrb[1].mxu1 }
  0xe4   :  { %v245_v42 = vpop.f32.mrb[2].mxu1 }
  0xe5   :  { %v246_v43 = vpop.f32.mrb[3].mxu1  ;;  %1442 = vmatpush1.bf16.msra.mxu1 %v1441_v0  ;;  %v1456_v42 = vpack.c.bf16 %v1126_v40, %v1125_v7  ;;  %v1082_v0 = vld [vmem:[%s1876_s3 + $0x78] sm:$0xff] }
  0xe6   :  { %1443 = vmatprep.subr.bf16.mxu1 %v1483_v34  ;;  %v1091_v43 = vld [vmem:[%s1876_s3 + $0xc0] sm:$0xff]  ;;  %v1414_v1 = vpack.c.bf16 %v1082_v0, %v1081_v63 }
  0xe9   :  { %1445 = vmatpush1.bf16.msra.mxu1 %v1444_v3 }
  0xea   :  { %1446 = vmatprep.subr.bf16.mxu1 %v1483_v34 }
  0xed   :  { %1448 = vmatpush1.bf16.msra.mxu1 %v1447_v13 }
  0xee   :  { %1449 = vmatprep.subr.bf16.mxu1 %v1483_v34 }
  0xf1   :  { %1451 = vmatpush1.bf16.msra.mxu1 %v1450_v22 }
  0xf2   :  { %1452 = vmatprep.subr.bf16.mxu1 %v1483_v34 }
  0xf5   :  { %1454 = vmatpush1.bf16.msra.mxu1 %v1453_v31 }
  0xf6   :  { %1455 = vmatprep.subr.bf16.mxu1 %v1483_v34  ;;  %v1400_v34 = vpack.c.bf16 %v1092_v44, %v1091_v43 }
  0xf8   :  { %1401 = vmatprep.subr.bf16.mxu0 %v1400_v34 }
  0xf9   :  { %1458 = vmatpush1.bf16.msk.msra.mxu1 %vm1457_vm12, %v1456_v42  ;;  %1403 = vmatpush3.bf16.msra.mxu0 %v1402_v47 }
  0xfa   :  { %1405 = vmatprep.subr.bf16.mxu0 %v1404_v50 }
  0xfd   :  { %1407 = vmatpush3.bf16.msra.mxu0 %v1406_v53 }
  0xfe   :  { %1409 = vmatprep.subr.bf16.mxu0 %v1408_v56 }
 0x101   :  { %1411 = vmatpush3.bf16.msra.mxu0 %v1410_v59 }
 0x102   :  { %1413 = vmatprep.subr.bf16.mxu0 %v1412_v62 }
 0x105   :  { %1415 = vmatpush3.bf16.msra.mxu0 %v1414_v1 }
 0x158   :  { %v103_v2 = vpop.f32.mrb[0].mxu0 }
 0x159   :  { %v105_v3 = vpop.f32.mrb[1].mxu0 }
 0x15a   :  { %v107_v4 = vpop.f32.mrb[2].mxu0 }
 0x15b   :  { %v108_v5 = vpop.f32.mrb[3].mxu0 }
 0x160   :  { %v144_v6 = vpop.f32.mrb[4].mxu0  ;;  %v352_v8 = vpop.f32.mrb[4].mxu1 }
 0x161   :  { %v242_v9 = vadd.f32 %v1679_v39, %v144_v6  ;;  %v146_v10 = vpop.f32.mrb[5].mxu0  ;;  %v354_v11 = vpop.f32.mrb[5].mxu1 }
 0x162   :  { %v244_v12 = vadd.f32 %v1681_v41, %v146_v10  ;;  %v148_v13 = vpop.f32.mrb[6].mxu0  ;;  %v356_v14 = vpop.f32.mrb[6].mxu1 }
 0x163   :  { %v361_v15 = vadd.f32 %v352_v8, %v242_v9  ;;  %v149_v16 = vpop.f32.mrb[7].mxu0  ;;  %v357_v17 = vpop.f32.mrb[7].mxu1 }
 0x164   :  { %v362_v18 = vadd.f32 %v354_v11, %v244_v12 }
 0x168   :  { %v200_v19 = vpop.f32.mrb[8].mxu0  ;;  %v467_v20 = vpop.f32.mrb[8].mxu1 }
 0x169   :  { %v201_v21 = vadd.f32 %v200_v19, %v103_v2  ;;  %v476_v22 = vadd.f32 %v467_v20, %v361_v15  ;;  %v202_v23 = vpop.f32.mrb[9].mxu0  ;;  %v469_v24 = vpop.f32.mrb[9].mxu1 }
 0x16a   :  { %v203_v25 = vadd.f32 %v202_v23, %v105_v3  ;;  %v477_v26 = vadd.f32 %v469_v24, %v362_v18  ;;  %v204_v27 = vpop.f32.mrb[10].mxu0  ;;  %v471_v39 = vpop.f32.mrb[10].mxu1 }
 0x16b   :  { %v205_v28 = vpop.f32.mrb[11].mxu0  ;;  %v472_v29 = vpop.f32.mrb[11].mxu1 }
 0x16c   :  { %v1057_v15 = vpop.permute.xlu0 %1056 }
 0x170   :  { %v311_v30 = vpop.f32.mrb[12].mxu0  ;;  %v582_v41 = vpop.f32.mrb[12].mxu1 }
 0x171   :  { %v359_v31 = vadd.f32 %v311_v30, %v201_v21  ;;  %v591_v32 = vadd.f32 %v582_v41, %v476_v22  ;;  %v313_v33 = vpop.f32.mrb[13].mxu0  ;;  %v584_v35 = vpop.f32.mrb[13].mxu1 }
 0x172   :  { %v360_v36 = vadd.f32 %v313_v33, %v203_v25  ;;  %v592_v37 = vadd.f32 %v584_v35, %v477_v26  ;;  %v315_v7 = vpop.f32.mrb[14].mxu0  ;;  %v586_v38 = vpop.f32.mrb[14].mxu1 }
 0x173   :  { %v316_v40 = vpop.f32.mrb[15].mxu0  ;;  %v587_v42 = vpop.f32.mrb[15].mxu1 }
 0x178   :  { %v426_v43 = vpop.f32.mrb[16].mxu0  ;;  %v697_v44 = vpop.f32.mrb[16].mxu1 }
 0x179   :  { %v474_v34 = vadd.f32 %v426_v43, %v359_v31  ;;  %v706_v45 = vadd.f32 %v697_v44, %v591_v32  ;;  %v428_v46 = vpop.f32.mrb[17].mxu0  ;;  %v699_v47 = vpop.f32.mrb[17].mxu1 }
 0x17a   :  { %v475_v48 = vadd.f32 %v428_v46, %v360_v36  ;;  %v707_v49 = vadd.f32 %v699_v47, %v592_v37  ;;  %v430_v50 = vpop.f32.mrb[18].mxu0  ;;  %v701_v51 = vpop.f32.mrb[18].mxu1 }
 0x17b   :  { %v431_v52 = vpop.f32.mrb[19].mxu0  ;;  %v702_v53 = vpop.f32.mrb[19].mxu1 }
 0x180   :  { %v541_v54 = vpop.f32.mrb[20].mxu0  ;;  %v812_v55 = vpop.f32.mrb[20].mxu1 }
 0x181   :  { %v589_v56 = vadd.f32 %v541_v54, %v474_v34  ;;  %v821_v57 = vadd.f32 %v812_v55, %v706_v45  ;;  %v543_v58 = vpop.f32.mrb[21].mxu0  ;;  %v814_v59 = vpop.f32.mrb[21].mxu1 }
 0x182   :  { %v590_v60 = vadd.f32 %v543_v58, %v475_v48  ;;  %v822_v61 = vadd.f32 %v814_v59, %v707_v49  ;;  %v545_v62 = vpop.f32.mrb[22].mxu0  ;;  %v816_v63 = vpop.f32.mrb[22].mxu1 }
 0x183   :  { %v546_v0 = vpop.f32.mrb[23].mxu0  ;;  %v817_v1 = vpop.f32.mrb[23].mxu1 }
 0x188   :  { %v656_v2 = vpop.f32.mrb[24].mxu0  ;;  %v927_v3 = vpop.f32.mrb[24].mxu1 }
 0x189   :  { %v704_v4 = vadd.f32 %v656_v2, %v589_v56  ;;  %v936_v5 = vadd.f32 %v927_v3, %v821_v57  ;;  %v658_v6 = vpop.f32.mrb[25].mxu0  ;;  %v929_v8 = vpop.f32.mrb[25].mxu1 }
 0x18a   :  { %v705_v9 = vadd.f32 %v658_v6, %v590_v60  ;;  %v937_v10 = vadd.f32 %v929_v8, %v822_v61  ;;  %v660_v11 = vpop.f32.mrb[26].mxu0  ;;  %v931_v12 = vpop.f32.mrb[26].mxu1 }
 0x18b   :  { %v661_v13 = vpop.f32.mrb[27].mxu0  ;;  %v932_v14 = vpop.f32.mrb[27].mxu1 }
 0x190   :  { %v771_v16 = vpop.f32.mrb[28].mxu0  ;;  %v1042_v17 = vpop.f32.mrb[28].mxu1 }
 0x191   :  { %v819_v18 = vadd.f32 %v771_v16, %v704_v4  ;;  %v1051_v19 = vadd.f32 %v1042_v17, %v936_v5  ;;  %v773_v20 = vpop.f32.mrb[29].mxu0  ;;  %v1044_v21 = vpop.f32.mrb[29].mxu1 }
 0x192   :  { %v820_v22 = vadd.f32 %v773_v20, %v705_v9  ;;  %v1052_v23 = vadd.f32 %v1044_v21, %v937_v10  ;;  %v775_v24 = vpop.f32.mrb[30].mxu0  ;;  %v1046_v25 = vpop.f32.mrb[30].mxu1 }
 0x193   :  { %v776_v26 = vpop.f32.mrb[31].mxu0  ;;  %v1047_v27 = vpop.f32.mrb[31].mxu1  ;;  %v1061_v28 = vadd.f32 %v1057_v15, %v1051_v19 }
 0x194   :  { %v1062_v39 = vadd.f32 %v1057_v15, %v1052_v23 }
 0x195   :  { %v1065_v32 = vand.u32 2147483647, %v1061_v28 }
 0x196   :  { %v1066_v29 = vand.u32 2147483647, %v1062_v39  ;;  %1344 = vmatprep.mubr.msk.f32.mxu1 %vm948_vm9, %v1062_v39 }
 0x197   :  { %1278 = vmatmul.mubr.f32.vlgmr.msra.gmra.mrb[32].mxu1 %v1061_v28 }
 0x198   :  { %v886_v30 = vpop.f32.mrb[32].mxu0  ;;  %1345 = vmatprep.mubr.msk.f32.mxu1 %vm948_vm9, %v1066_v29 }
 0x199   :  { %v934_v41 = vadd.f32 %v886_v30, %v819_v18  ;;  %v888_v31 = vpop.f32.mrb[33].mxu0 }
 0x19a   :  { %v935_v33 = vadd.f32 %v888_v31, %v820_v22  ;;  %v890_v35 = vpop.f32.mrb[34].mxu0 }
 0x19b   :  { %v891_v36 = vpop.f32.mrb[35].mxu0  ;;  %1283 = vmatmul.mubr.f32.gmra.mrb[34].mxu1 %v1065_v32 }
 0x1a0   :  { %v1001_v37 = vpop.f32.mrb[36].mxu0 }
 0x1a1   :  { %v1049_v7 = vadd.f32 %v1001_v37, %v934_v41  ;;  %v1003_v38 = vpop.f32.mrb[37].mxu0 }
 0x1a2   :  { %v1050_v40 = vadd.f32 %v1003_v38, %v935_v33  ;;  %v1005_v42 = vpop.f32.mrb[38].mxu0 }
 0x1a3   :  { %v1006_v43 = vpop.f32.mrb[39].mxu0  ;;  %v1059_v34 = vadd.f32 %v1057_v15, %v1049_v7 }
 0x1a4   :  { %v1060_v44 = vadd.f32 %v1057_v15, %v1050_v40 }
 0x1a5   :  { %v1063_v46 = vand.u32 2147483647, %v1059_v34 }
 0x1a6   :  { %1202 = vmatprep.mubr.f32.mxu0 %v1060_v44  ;;  %v1064_v45 = vand.u32 2147483647, %v1060_v44 }
 0x1a7   :  { %1203 = vmatmul.mubr.f32.vlgmr.msra.gmra.mrb[40].mxu0 %v1059_v34 }
 0x1a8   :  { %1207 = vmatprep.mubr.f32.mxu0 %v1064_v45 }
 0x1ab   :  { %1208 = vmatmul.mubr.f32.gmra.mrb[42].mxu0 %v1063_v46 }
 0x26a   :  { %v1279_v47 = vpop.f32.mrb[32].mxu1 }
 0x26b   :  { %v1281_v48 = vpop.f32.mrb[33].mxu1 }
 0x26e   :  { %v1284_v49 = vpop.f32.mrb[34].mxu1 }
 0x26f   :  { %v1286_v50 = vpop.f32.mrb[35].mxu1 }
 0x27a   :  { %v1378_v51 = vpop.f32.mrb[40].mxu0 }
 0x27b   :  { %v1379_v52 = vpop.f32.mrb[41].mxu0 }
 0x27c   :  { %v1380_v53 = vadd.f32 %v1379_v52, %v1378_v51 }
 0x27e   :  { %v1280_v54 = vadd.f32 %v1380_v53, %v1279_v47  ;;  %v1381_v55 = vpop.f32.mrb[42].mxu0 }
 0x27f   :  { %v1382_v56 = vpop.f32.mrb[43].mxu0 }
 0x280   :  { %v1383_v57 = vadd.f32 %v1382_v56, %v1381_v55 }
 0x282   :  { %v1285_v58 = vadd.f32 %v1383_v57, %v1284_v49 }
 0x284   :  { %v1288_v59 = vadd.f32 %v1285_v58, %v1280_v54  ;;  %v1290_v60 = vsub.f32 %v1285_v58, %v1280_v54 }
 0x286   :  { %v1289_v61 = vmul.f32 0.0025510204, %v1288_v59  ;;  %v1291_v62 = vmul.f32 0.0025510204, %v1290_v60 }
 0x288   :  { %1293 = vst.msk [vmem:[%s1877_s4] sm:$0xff] %vm1292_vm13, %v1289_v61  ;;  %1294 = vst.msk [vmem:[%s1877_s4 + $0x8] sm:$0xff] %vm1292_vm13, %v1291_v62 }

</bundles_post_ra>
